<compile_context>
chip_gen: v6e
topology: v6e:2x2x1
jax: 0.10.0
libtpu: 0.0.40
codegen_flags: <defaults>
</compile_context>

<pallas_src>
import functools

import jax
import jax.numpy as jnp
from jax.experimental import pallas as pl
from jax.experimental.pallas import tpu as pltpu


def _round_up(x, m):
    return ((x + m - 1) // m) * m


_VMEM_BUDGET_BYTES = 40 * 1024 * 1024   # batch-tile-scaled VMEM budget
_VMEM_LIMIT_BYTES = 48 * 1024 * 1024    # < v7x's 64 MiB physical VMEM


def encoder_kernel(x_ref, w1_ref, b1_ref, w2_ref, b2_ref, o_ref):
    # In-kernel bf16 cast of the activation tile (VPU work, hidden under DMA).
    x = x_ref[...].astype(w1_ref.dtype)
    # fc1 (bf16 MXU matmul, f32 accumulation) + bias + ReLU in f32.
    h = jnp.dot(x, w1_ref[...], preferred_element_type=jnp.float32)
    h = jnp.maximum(h + b1_ref[...], 0.0)                    # (TB, hidden_p)
    # fc2 (bf16 MXU matmul, f32 accumulation) + bias.
    o = jnp.dot(h.astype(w2_ref.dtype), w2_ref[...],
                preferred_element_type=jnp.float32)
    o_ref[...] = (o + b2_ref[...]).astype(o_ref.dtype)       # (TB, out_dim)


def prepare_params(w1, b1, w2, b2, compute_dtype=jnp.bfloat16):
    """One-time parameter prep (hoisted out of the per-call forward path):
    pad hidden to a multiple of 128 and cast weights to the MXU dtype.
    Weights are (in, out), i.e. transposed w.r.t. torch nn.Linear's (out, in)."""
    d_in, hidden = w1.shape
    hidden_p = _round_up(hidden, 128)
    w1p = jnp.pad(w1, ((0, 0), (0, hidden_p - hidden))).astype(compute_dtype)
    b1p = jnp.pad(jnp.reshape(b1, (1, -1)),
                  ((0, 0), (0, hidden_p - hidden))).astype(jnp.float32)
    w2p = jnp.pad(w2, ((0, hidden_p - hidden), (0, 0))).astype(compute_dtype)
    b2p = jnp.reshape(b2, (1, -1)).astype(jnp.float32)
    return w1p, b1p, w2p, b2p


def _choose_batch_tile(batch, d_in, hidden_p, out_dim, x_itemsize, tb_max):
    # VMEM bytes that scale with the batch tile: double-buffered x/out blocks
    # plus the main in-kernel temporaries (bf16 x copy, f32/bf16 h).
    bytes_per_row = (2 * d_in * x_itemsize      # x double buffer
                     + d_in * 2                 # bf16 cast of x
                     + hidden_p * (4 + 2)       # h in f32 and bf16
                     + 3 * out_dim * 4)         # o temp + double-buffered out
    tb_fit = max(8, (_VMEM_BUDGET_BYTES // bytes_per_row) // 8 * 8)
    tb_cap = max(8, min(tb_max, tb_fit))
    # Balance tiles (avoid padding batch=tb_cap+1 up to 2*tb_cap) and keep
    # >=2 grid steps for moderate batches so v7x's two TCs both get work.
    min_tiles = 2 if batch >= 16 else 1
    num_tiles = max(pl.cdiv(batch, tb_cap), min_tiles)
    tb = min(tb_cap, _round_up(pl.cdiv(batch, num_tiles), 8))
    return tb


def encoder_forward(x, w1p, b1p, w2p, b2p, *, input_h, input_w, latent_size,
                    tb_max=2048):
    """x: (B,1,H,W) / (B,H,W) / (B,H*W), f32 or bf16.  Params from
    prepare_params().  Returns (B, 2, latent_size) float32."""
    d_in = input_h * input_w
    x2d = x.reshape(-1, d_in)                  # torch .view(-1, H*W)
    batch = x2d.shape[0]
    hidden_p = w1p.shape[1]
    out_dim = w2p.shape[1]                     # 2 * latent_size (unpadded)

    x_bytes = jnp.dtype(x2d.dtype).itemsize
    tb = _choose_batch_tile(batch, d_in, hidden_p, out_dim, x_bytes, tb_max)
    batch_p = _round_up(batch, tb)
    xp = x2d if batch_p == batch else jnp.pad(x2d, ((0, batch_p - batch), (0, 0)))
    grid = (batch_p // tb,)

    # TODO(synk): if d_in ever grows past ~2048, add a K grid axis with a VMEM
    # f32 accumulator (pl.when init/finalize) to bound the x tile on v7x.

    w_bytes = jnp.dtype(w1p.dtype).itemsize
    flops = 2 * batch_p * (d_in * hidden_p + hidden_p * out_dim)
    bytes_accessed = (batch_p * d_in * x_bytes
                      + w1p.size * w_bytes + w2p.size * w_bytes
                      + b1p.size * 4 + b2p.size * 4
                      + batch_p * out_dim * 4)

    out = pl.pallas_call(
        encoder_kernel,
        out_shape=jax.ShapeDtypeStruct((batch_p, out_dim), jnp.float32),
        grid_spec=pltpu.PrefetchScalarGridSpec(
            num_scalar_prefetch=0,
            grid=grid,
            in_specs=[
                pl.BlockSpec((tb, d_in), lambda i: (i, 0)),           # x tile
                pl.BlockSpec((d_in, hidden_p), lambda i: (0, 0)),     # w1 resident
                pl.BlockSpec((1, hidden_p), lambda i: (0, 0)),        # b1 resident
                pl.BlockSpec((hidden_p, out_dim), lambda i: (0, 0)),  # w2 resident
                pl.BlockSpec((1, out_dim), lambda i: (0, 0)),         # b2 resident
            ],
            out_specs=pl.BlockSpec((tb, out_dim), lambda i: (i, 0)),
        ),
        compiler_params=pltpu.CompilerParams(
            dimension_semantics=("parallel",),
            vmem_limit_bytes=_VMEM_LIMIT_BYTES),
        cost_estimate=pl.CostEstimate(flops=flops, transcendentals=0,
                                      bytes_accessed=bytes_accessed),
    )(xp, w1p, b1p, w2p, b2p)

    if batch_p != batch:
        out = out[:batch]
    return out.reshape(batch, 2, latent_size)


def init_params(key, input_h, input_w, hidden_size, latent_size, dtype=jnp.float32):
    """Deterministic init mimicking nn.Linear's U(-1/sqrt(fan_in), 1/sqrt(fan_in)).
    Weights stored as (in, out) — transpose torch checkpoints before loading."""
    d_in = input_h * input_w
    k1, k2, k3, k4 = jax.random.split(key, 4)
    bound1 = 1.0 / jnp.sqrt(d_in)
    bound2 = 1.0 / jnp.sqrt(hidden_size)
    w1 = jax.random.uniform(k1, (d_in, hidden_size), dtype, -bound1, bound1)
    b1 = jax.random.uniform(k2, (1, hidden_size), dtype, -bound1, bound1)
    w2 = jax.random.uniform(k3, (hidden_size, 2 * latent_size), dtype, -bound2, bound2)
    b2 = jax.random.uniform(k4, (1, 2 * latent_size), dtype, -bound2, bound2)
    return w1, b1, w2, b2


if __name__ == "__main__":
    # Small shapes consistent with the module's forward.
    batch, input_h, input_w = 2, 16, 16
    hidden_size, latent_size = 32, 8

    key = jax.random.PRNGKey(0)
    kx, kp = jax.random.split(key)
    x = jax.random.normal(kx, (batch, 1, input_h, input_w), jnp.float32)  # NCHW
    w1, b1, w2, b2 = init_params(kp, input_h, input_w, hidden_size, latent_size)

    # One-time param prep (padding + bf16 cast) hoisted out of the call path.
    w1p, b1p, w2p, b2p = prepare_params(w1, b1, w2, b2)

    fwd = jax.jit(functools.partial(encoder_forward, input_h=input_h,
                                    input_w=input_w, latent_size=latent_size))
    out = fwd(x, w1p, b1p, w2p, b2p)
    out = jax.block_until_ready(out)
    assert out.shape == (batch, 2, latent_size), out.shape

    # Reference matching the kernel's compute path (bf16 matmul inputs, f32
    # accumulation, f32 bias/ReLU) — should agree tightly.
    x2d = x.reshape(-1, input_h * input_w)
    cd = jnp.bfloat16
    h_ref = jnp.dot(x2d.astype(cd), w1.astype(cd),
                    preferred_element_type=jnp.float32)
    h_ref = jnp.maximum(h_ref + b1, 0.0)
    ref = jnp.dot(h_ref.astype(cd), w2.astype(cd),
                  preferred_element_type=jnp.float32) + b2
    ref = ref.reshape(-1, 2, latent_size)
    assert jnp.allclose(out, ref, atol=2e-2, rtol=2e-2), \
        float(jnp.max(jnp.abs(out - ref)))

    # Loose sanity check against pure-f32 math (bf16 rounding tolerance).
    ref32 = (jnp.maximum(x2d @ w1 + b1, 0.0) @ w2 + b2).reshape(-1, 2, latent_size)
    assert jnp.allclose(out, ref32, atol=1e-1, rtol=1e-1), \
        float(jnp.max(jnp.abs(out - ref32)))

    print("KERNEL_OK")
</pallas_src>

<mosaic_0001>
module attributes {stable_mosaic.version = 11 : i64} {
  func.func @encoder_kernel(%arg0: i32, %arg1: memref<8x256xf32, #tpu.memory_space<vmem>>, %arg2: memref<256x128xbf16, #tpu.memory_space<vmem>>, %arg3: memref<1x128xf32, #tpu.memory_space<vmem>>, %arg4: memref<128x16xbf16, #tpu.memory_space<vmem>>, %arg5: memref<1x16xf32, #tpu.memory_space<vmem>>, %arg6: memref<8x16xf32, #tpu.memory_space<vmem>>) attributes {dimension_semantics = [#tpu.dimension_semantics<parallel>], iteration_bounds = array<i64: 1>, scalar_prefetch = 0 : i64, scratch_operands = 0 : i64, tpu.core_type = #tpu.core_type<tc>, window_params = [{transform_indices = @transform_0, window_bounds = array<i64: 8, 256>}, {pipeline_mode = #tpu.pipeline_mode<synchronous>, transform_indices = @transform_1, window_bounds = array<i64: 256, 128>}, {pipeline_mode = #tpu.pipeline_mode<synchronous>, transform_indices = @transform_2, window_bounds = array<i64: 1, 128>}, {pipeline_mode = #tpu.pipeline_mode<synchronous>, transform_indices = @transform_3, window_bounds = array<i64: 128, 16>}, {pipeline_mode = #tpu.pipeline_mode<synchronous>, transform_indices = @transform_4, window_bounds = array<i64: 1, 16>}, {transform_indices = @transform_5, window_bounds = array<i64: 8, 16>}]} {
    %c0 = arith.constant 0 : index
    %c0_0 = arith.constant 0 : index
    %0 = vector.load %arg1[%c0, %c0_0] : memref<8x256xf32, #tpu.memory_space<vmem>>, vector<8x256xf32>
    %1 = arith.truncf %0 : vector<8x256xf32> to vector<8x256xbf16>
    %c0_1 = arith.constant 0 : index
    %c0_2 = arith.constant 0 : index
    %2 = vector.load %arg2[%c0_1, %c0_2] : memref<256x128xbf16, #tpu.memory_space<vmem>>, vector<256x128xbf16>
    %cst = arith.constant dense<0.000000e+00> : vector<8x128xf32>
    %3 = tpu.matmul %1, %2, %cst {dimension_numbers = #tpu.dot_dimension_numbers<[1], [0], [0], [1], [0, 0, 1, 1], [], []>} : vector<8x256xbf16>, vector<256x128xbf16>, vector<8x128xf32> -> vector<8x128xf32>
    %c0_3 = arith.constant 0 : index
    %c0_4 = arith.constant 0 : index
    %4 = vector.load %arg3[%c0_3, %c0_4] : memref<1x128xf32, #tpu.memory_space<vmem>>, vector<1x128xf32>
    %5 = vector.broadcast %4 : vector<1x128xf32> to vector<8x128xf32>
    %6 = arith.addf %3, %5 : vector<8x128xf32>
    %cst_5 = arith.constant 0.000000e+00 : f32
    %7 = vector.broadcast %cst_5 : f32 to vector<8x128xf32>
    %8 = arith.maximumf %6, %7 : vector<8x128xf32>
    %9 = arith.truncf %8 : vector<8x128xf32> to vector<8x128xbf16>
    %c0_6 = arith.constant 0 : index
    %c0_7 = arith.constant 0 : index
    %10 = vector.load %arg4[%c0_6, %c0_7] : memref<128x16xbf16, #tpu.memory_space<vmem>>, vector<128x16xbf16>
    %cst_8 = arith.constant dense<0.000000e+00> : vector<8x16xf32>
    %11 = tpu.matmul %9, %10, %cst_8 {dimension_numbers = #tpu.dot_dimension_numbers<[1], [0], [0], [1], [0, 0, 1, 1], [], []>} : vector<8x128xbf16>, vector<128x16xbf16>, vector<8x16xf32> -> vector<8x16xf32>
    %c0_9 = arith.constant 0 : index
    %c0_10 = arith.constant 0 : index
    %12 = vector.load %arg5[%c0_9, %c0_10] : memref<1x16xf32, #tpu.memory_space<vmem>>, vector<1x16xf32>
    %13 = vector.broadcast %12 : vector<1x16xf32> to vector<8x16xf32>
    %14 = arith.addf %11, %13 : vector<8x16xf32>
    %c0_11 = arith.constant 0 : index
    %c0_12 = arith.constant 0 : index
    %15 = vector.load %arg6[%c0_11, %c0_12] : memref<8x16xf32, #tpu.memory_space<vmem>>, vector<8x16xf32>
    tpu.vector_store %arg6[%c0_11, %c0_12], %14 {strides = array<i32>} : memref<8x16xf32, #tpu.memory_space<vmem>>, vector<8x16xf32>,
    return
  }
  func.func @transform_0(%arg0: i32) -> (i32, i32) {
    %c0_i32 = arith.constant 0 : i32
    %c0_i32_0 = arith.constant 0 : i32
    return %arg0, %c0_i32 : i32, i32
  }
  func.func @transform_1(%arg0: i32) -> (i32, i32) {
    %c0_i32 = arith.constant 0 : i32
    %c0_i32_0 = arith.constant 0 : i32
    %c0_i32_1 = arith.constant 0 : i32
    return %c0_i32, %c0_i32_0 : i32, i32
  }
  func.func @transform_2(%arg0: i32) -> (i32, i32) {
    %c0_i32 = arith.constant 0 : i32
    %c0_i32_0 = arith.constant 0 : i32
    %c0_i32_1 = arith.constant 0 : i32
    return %c0_i32, %c0_i32_0 : i32, i32
  }
  func.func @transform_3(%arg0: i32) -> (i32, i32) {
    %c0_i32 = arith.constant 0 : i32
    %c0_i32_0 = arith.constant 0 : i32
    %c0_i32_1 = arith.constant 0 : i32
    return %c0_i32, %c0_i32_0 : i32, i32
  }
  func.func @transform_4(%arg0: i32) -> (i32, i32) {
    %c0_i32 = arith.constant 0 : i32
    %c0_i32_0 = arith.constant 0 : i32
    %c0_i32_1 = arith.constant 0 : i32
    return %c0_i32, %c0_i32_0 : i32, i32
  }
  func.func @transform_5(%arg0: i32) -> (i32, i32) {
    %c0_i32 = arith.constant 0 : i32
    %c0_i32_0 = arith.constant 0 : i32
    return %arg0, %c0_i32 : i32, i32
  }
}

</mosaic_0001>

<bundles_post_ra>
// kernel: encoder_forward.1
= control target key start
LH: loop header
LB: loop body
LE: loop exit
PB: predicated region body
PF: predicated region fallthrough
CT: control target
= control target key end

     0   :  { %v422_v1 = vmov 0.0   ;;  %vm423_vm0 = vmmov 0   ;;  %vm313_vm1 = vcmask 130048   ;;  %s550_s1 = inlined_call_operand.vmem [shape: bf16[256,128], index: 1, kind: input, shape index: {}]   ;;  %s551_s0 = inlined_call_operand.vmem [shape: f32[8,256], index: 0, kind: input, shape index: {}]   ;;  %s552_s3 = inlined_call_operand.vmem [shape: bf16[128,16], index: 3, kind: input, shape index: {}]   ;;  %s553_s2 = inlined_call_operand.vmem [shape: f32[1,128], index: 2, kind: input, shape index: {}]   ;;  %s554_s4 = inlined_call_operand.vmem [shape: f32[1,16], index: 4, kind: input, shape index: {}]   ;;  %s555_s5 = inlined_call_operand.vmem [shape: f32[8,16], index: 5, kind: output, shape index: {}]  }
   0x1   :  { %v398_v0 = vld [vmem:[%s550_s1 + $0x78] sm:$0xff]   ;;  %376 = vmatprep.subr.bf16.mxu1 %v422_v1  ;;  %v400_v3 = vld [vmem:[%s550_s1 + $0x70] sm:$0xff]   ;;  %v402_v5 = vld [vmem:[%s550_s1 + $0x68] sm:$0xff]   ;;  %392 = vmatprep.mubr.msk.bf16.mxu1 %vm423_vm0, %v422_v1 }
   0x2   :  { %v399_v2 = vld [vmem:[%s550_s1 + $0x38] sm:$0xff]   ;;  %345 = vmatprep.subr.bf16.mxu0 %v398_v0  ;;  %v401_v4 = vld [vmem:[%s550_s1 + $0x30] sm:$0xff]   ;;  %v403_v6 = vld [vmem:[%s550_s1 + $0x28] sm:$0xff]  }
   0x3   :  { %346 = vmatpush3.bf16.msra.mxu0 %v399_v2  ;;  %v404_v7 = vld [vmem:[%s550_s1 + $0x60] sm:$0xff]   ;;  %v406_v9 = vld [vmem:[%s550_s1 + $0x58] sm:$0xff]   ;;  %v408_v11 = vld [vmem:[%s550_s1 + $0x50] sm:$0xff]  }
   0x4   :  { %347 = vmatprep.subr.bf16.mxu0 %v400_v3  ;;  %v405_v8 = vld [vmem:[%s550_s1 + $0x20] sm:$0xff]   ;;  %v407_v10 = vld [vmem:[%s550_s1 + $0x18] sm:$0xff]   ;;  %v22_v12 = vld [vmem:[%s551_s0 + $0x8] sm:$0xff] }
   0x5   :  { %v24_v13 = vpack.c.bf16 %v22_v12, %v22_v12  ;;  %v414_v14 = vld [vmem:[%s552_s3 + $0x38] sm:$0xff]   ;;  %v409_v15 = vld [vmem:[%s550_s1 + $0x10] sm:$0xff]   ;;  %v410_v16 = vld [vmem:[%s550_s1 + $0x48] sm:$0xff]  }
   0x6   :  { %377 = vmatpush3.bf16.msra.mxu1 %v414_v14  ;;  %v415_v17 = vld [vmem:[%s552_s3 + $0x30] sm:$0xff]   ;;  %v411_v18 = vld [vmem:[%s550_s1 + $0x8] sm:$0xff]   ;;  %v412_v19 = vld [vmem:[%s550_s1 + $0x40] sm:$0xff]  }
   0x7   :  { %348 = vmatpush3.bf16.msra.mxu0 %v401_v4  ;;  %192 = vmatprep.mubr.bf16.mxu0 %v24_v13  ;;  %v416_v20 = vld [vmem:[%s552_s3 + $0x28] sm:$0xff]   ;;  %v413_v21 = vld [vmem:[%s550_s1] sm:$0xff]   ;;  %v418_v25 = vld [vmem:[%s552_s3 + $0x18] sm:$0xff]  }
   0x8   :  { %349 = vmatprep.subr.bf16.mxu0 %v402_v5  ;;  %378 = vmatprep.subr.bf16.mxu1 %v422_v1  ;;  %v21_v22 = vld [vmem:[%s551_s0] sm:$0xff]  ;;  %v419_v26 = vld [vmem:[%s552_s3 + $0x10] sm:$0xff]   ;;  %v420_v27 = vld [vmem:[%s552_s3 + $0x8] sm:$0xff]  }
   0x9   :  { %v417_v23 = vld [vmem:[%s552_s3 + $0x20] sm:$0xff]   ;;  %v23_v24 = vpack.c.bf16 %v21_v22, %v21_v22 }
   0xa   :  { %379 = vmatpush3.bf16.msra.mxu1 %v415_v17  ;;  %v421_v28 = vld [vmem:[%s552_s3] sm:$0xff]  }
   0xb   :  { %350 = vmatpush3.bf16.msra.mxu0 %v403_v6  ;;  %380 = vmatprep.subr.bf16.mxu1 %v422_v1  ;;  %v319_v30 = vld [vmem:[%s553_s2] ss:$0 sm:$0xff] }
   0xc   :  { %351 = vmatprep.subr.bf16.mxu0 %v404_v7  ;;  %v336_v38 = vld [vmem:[%s554_s4] ss:$0 sm:$0xff] }
   0xe   :  { %381 = vmatpush3.bf16.msra.mxu1 %v416_v20 }
   0xf   :  { %352 = vmatpush3.bf16.msra.mxu0 %v405_v8  ;;  %382 = vmatprep.subr.bf16.mxu1 %v422_v1 }
  0x10   :  { %353 = vmatprep.subr.bf16.mxu0 %v406_v9 }
  0x12   :  { %383 = vmatpush3.bf16.msra.mxu1 %v417_v23 }
  0x13   :  { %354 = vmatpush3.bf16.msra.mxu0 %v407_v10  ;;  %384 = vmatprep.subr.bf16.mxu1 %v422_v1 }
  0x14   :  { %355 = vmatprep.subr.bf16.mxu0 %v408_v11 }
  0x16   :  { %385 = vmatpush3.bf16.msra.mxu1 %v418_v25 }
  0x17   :  { %356 = vmatpush3.bf16.msra.mxu0 %v409_v15  ;;  %386 = vmatprep.subr.bf16.mxu1 %v422_v1 }
  0x18   :  { %357 = vmatprep.subr.bf16.mxu0 %v410_v16 }
  0x1a   :  { %387 = vmatpush3.bf16.msra.mxu1 %v419_v26 }
  0x1b   :  { %358 = vmatpush3.bf16.msra.mxu0 %v411_v18  ;;  %388 = vmatprep.subr.bf16.mxu1 %v422_v1 }
  0x1c   :  { %359 = vmatprep.subr.bf16.mxu0 %v412_v19 }
  0x1e   :  { %389 = vmatpush3.bf16.msra.mxu1 %v420_v27 }
  0x1f   :  { %360 = vmatpush3.bf16.msra.mxu0 %v413_v21  ;;  %390 = vmatprep.subr.bf16.mxu1 %v422_v1 }
  0x22   :  { %193 = vmatmul.mubr.bf16.vlgmr.msra.gmra.mxu0 %v23_v24  ;;  %391 = vmatpush3.bf16.msra.mxu1 %v421_v28 }
  0xe2   :  { %v361_v29 = vpop.f32.mrf.mxu0 }
  0xe4   :  { %v362_v31 = vpop.f32.mrf.mxu0 }
  0xe5   :  { %v363_v32 = vadd.f32 %v362_v31, %v361_v29 }
  0xe6   :  { %v364_v33 = vpop.f32.mrf.mxu0 }
  0xe7   :  { %v195_v34 = vadd.f32 %v363_v32, %v319_v30 }
  0xe8   :  { %v365_v35 = vpop.f32.mrf.mxu0 }
  0xe9   :  { %v200_v36 = vmax.f32 %v195_v34, 0.0 }
  0xeb   :  { %v201_v37 = vpack.c.bf16 %v200_v36, %v200_v36 }
  0xed   :  { %393 = vmatmul.mubr.bf16.vlgmr.msra.gmra.mxu1 %v201_v37 }
 0x1ad   :  { %v307_v39 = vpop.f32.mrf.mxu1 }
 0x1ae   :  { %v308_v40 = vadd.f32 %v336_v38, %v307_v39 }
 0x1af   :  { %v394_v41 = vpop.f32.mrf.mxu1 }
 0x1b0   :  { %314 = vst.msk [vmem:[%s555_s5] sm:$0xff] %vm313_vm1, %v308_v40 }
 0x1b1   :  { %v310_v42 = vpop.f32.mrf.mxu1 }
 0x1b3   :  { %v395_v43 = vpop.f32.mrf.mxu1 }

</bundles_post_ra>
